<compile_context>
chip_gen: v6e
topology: v6e:2x2x1
jax: 0.10.0
libtpu: 0.0.40
codegen_flags: <defaults>
</compile_context>

<pallas_src>
import jax
import jax.numpy as jnp
from jax.experimental import pallas as pl
from jax.experimental.pallas import tpu as pltpu

_LANE = 128          # TPU lane width (last-dim tiling quantum)
_SUBLANE = 8         # sublane quantum (second-to-last dim)
_MAX_ROWS = 4096     # rows of 128 elements per grid step: 4 MiB in + 2 MiB out
_PAR_ROWS = 2048     # only force a >=4-way split if each step still gets >=3 MiB


def _cdiv(a, b):
    return -(-a // b)


def _round_up(v, m):
    return _cdiv(v, m) * m


def _affine_kernel(coef_ref, x_ref, o_ref):
    # coef_ref: SMEM (3,)            -> [a, b, c]  (fused weights / bias)
    # x_ref   : VMEM (2, ROWS, 128)  -> x_ref[0] = x0 rows, x_ref[1] = x1 rows
    # o_ref   : VMEM (ROWS, 128)     -> sublane- and lane-dense output block
    a = coef_ref[0]
    b = coef_ref[1]
    c = coef_ref[2]
    o_ref[...] = x_ref[0] * a + x_ref[1] * b + c   # two VPU FMAs, no MXU


def circle_model_v1(x, w1, b1, w2, b2):
    """Forward pass of CircleModelv1: layer_2(layer_1(x)).

    Args:
      x : [N, 2] float32
      w1: [5, 2] float32 (PyTorch layout: [out_features, in_features])
      b1: [5]    float32
      w2: [1, 5] float32
      b2: [1]    float32
    Returns:
      [N, 1] float32 logits.
    """
    n = x.shape[0]

    # ---- Fuse the two linear layers (exact: no activation in between). ----
    w_eff = jnp.transpose(w1) @ jnp.transpose(w2)                       # [2, 1]
    b_eff = b1 @ jnp.transpose(w2) + b2                                 # [1]
    coef = jnp.concatenate([w_eff[:, 0], b_eff]).astype(jnp.float32)    # (3,) = [a, b, c]

    # ---- Right-sized, sublane-dense tiling over the batch. ----
    r_total = _cdiv(n, _LANE)                         # rows of 128 batch elements
    num_steps = _cdiv(r_total, _MAX_ROWS)
    if r_total >= 4 * _PAR_ROWS:
        # Enough work that a >=4-way split keeps >=3 MiB/step: lets the
        # "parallel" grid axis feed both TensorCores on v7x.
        num_steps = max(num_steps, 4)
    rows = _round_up(_cdiv(r_total, num_steps), _SUBLANE)   # rows per grid step
    r_pad = num_steps * rows
    n_pad = r_pad * _LANE

    # Transpose + pad + reshape to the [2, R, 128] dense layout (XLA fuses the
    # transpose and pad into a single copy).  Padded slots are zero -> output c.
    x_t = jnp.transpose(x).astype(jnp.float32)        # [2, N]
    x_t = jnp.pad(x_t, ((0, 0), (0, n_pad - n)))      # [2, n_pad]
    x_3d = x_t.reshape(2, r_pad, _LANE)               # [2, r_pad, 128]

    out = pl.pallas_call(
        _affine_kernel,
        out_shape=jax.ShapeDtypeStruct((r_pad, _LANE), jnp.float32),
        grid_spec=pltpu.PrefetchScalarGridSpec(
            num_scalar_prefetch=1,                    # coef -> SMEM before the grid runs
            grid=(num_steps,),
            # index_maps receive the scalar-prefetch ref as trailing positional arg.
            in_specs=[pl.BlockSpec((2, rows, _LANE), lambda i, coef: (0, i, 0))],
            out_specs=pl.BlockSpec((rows, _LANE), lambda i, coef: (i, 0)),
        ),
        compiler_params=pltpu.CompilerParams(
            # Independent batch tiles -> shard across both TensorCores on v7x;
            # measured no-op on single-TC v5e/v6e.
            dimension_semantics=("parallel",),
            # 12 MiB double-buffered at ROWS=4096; raise the scoped limit so the
            # v5e default (16 MiB) is not a constraint and v7x keeps headroom.
            vmem_limit_bytes=32 * 1024 * 1024,
        ),
        # v7x tuning knob (after the big blocks): pipeline_mode=pl.Buffered(3)
        # on the x BlockSpec can hide residual DMA jitter; default 2 is fine.
    )(coef, x_3d)

    return out.reshape(n_pad)[:n].reshape(n, 1).astype(x.dtype)


def _init_linear(key, out_features, in_features):
    """Deterministic nn.Linear-style init: U(-1/sqrt(fan_in), 1/sqrt(fan_in))."""
    k_w, k_b = jax.random.split(key)
    bound = 1.0 / jnp.sqrt(jnp.float32(in_features))
    w = jax.random.uniform(k_w, (out_features, in_features), jnp.float32,
                           minval=-bound, maxval=bound)
    b = jax.random.uniform(k_b, (out_features,), jnp.float32,
                           minval=-bound, maxval=bound)
    return w, b


if __name__ == "__main__":
    key = jax.random.PRNGKey(0)
    k_x, k_l1, k_l2 = jax.random.split(key, 3)

    # Small batch of 2-D points; 200 is deliberately NOT a multiple of 128 so the
    # lane-padding / un-padding path is exercised.
    n = 200
    x = jax.random.normal(k_x, (n, 2), jnp.float32)

    w1, b1 = _init_linear(k_l1, 5, 2)   # layer_1: Linear(2, 5)
    w2, b2 = _init_linear(k_l2, 1, 5)   # layer_2: Linear(5, 1)

    out = circle_model_v1(x, w1, b1, w2, b2)
    out = jax.block_until_ready(out)

    # Reference in plain JAX: (x @ W1^T + b1) @ W2^T + b2
    ref = (x @ w1.T + b1) @ w2.T + b2
    assert out.shape == (n, 1), out.shape
    assert jnp.allclose(out, ref, atol=1e-5), float(jnp.max(jnp.abs(out - ref)))

    print("KERNEL_OK")
</pallas_src>

<mosaic_0001>
module attributes {stable_mosaic.version = 11 : i64} {
  func.func @_affine_kernel(%arg0: i32, %arg1: memref<3xf32, #tpu.memory_space<smem>>, %arg2: memref<2x8x128xf32, #tpu.memory_space<vmem>>, %arg3: memref<8x128xf32, #tpu.memory_space<vmem>>) attributes {dimension_semantics = [#tpu.dimension_semantics<parallel>], iteration_bounds = array<i64: 1>, scalar_prefetch = 1 : i64, scratch_operands = 0 : i64, tpu.core_type = #tpu.core_type<tc>, window_params = [{transform_indices = @transform_0, window_bounds = array<i64: 2, 8, 128>}, {transform_indices = @transform_1, window_bounds = array<i64: 8, 128>}]} {
    %c0 = arith.constant 0 : index
    %0 = memref.load %arg1[%c0] : memref<3xf32, #tpu.memory_space<smem>>
    %c1 = arith.constant 1 : index
    %1 = memref.load %arg1[%c1] : memref<3xf32, #tpu.memory_space<smem>>
    %c2 = arith.constant 2 : index
    %2 = memref.load %arg1[%c2] : memref<3xf32, #tpu.memory_space<smem>>
    %c0_0 = arith.constant 0 : index
    %c0_1 = arith.constant 0 : index
    %c0_2 = arith.constant 0 : index
    %3 = vector.load %arg2[%c0_0, %c0_1, %c0_2] : memref<2x8x128xf32, #tpu.memory_space<vmem>>, vector<1x8x128xf32>
    %4 = vector.shape_cast %3 : vector<1x8x128xf32> to vector<8x128xf32>
    %5 = vector.broadcast %0 : f32 to vector<8x128xf32>
    %6 = arith.mulf %4, %5 : vector<8x128xf32>
    %c1_3 = arith.constant 1 : index
    %c0_4 = arith.constant 0 : index
    %c0_5 = arith.constant 0 : index
    %7 = vector.load %arg2[%c1_3, %c0_4, %c0_5] : memref<2x8x128xf32, #tpu.memory_space<vmem>>, vector<1x8x128xf32>
    %8 = vector.shape_cast %7 : vector<1x8x128xf32> to vector<8x128xf32>
    %9 = vector.broadcast %1 : f32 to vector<8x128xf32>
    %10 = arith.mulf %8, %9 : vector<8x128xf32>
    %11 = arith.addf %6, %10 : vector<8x128xf32>
    %12 = vector.broadcast %2 : f32 to vector<8x128xf32>
    %13 = arith.addf %11, %12 : vector<8x128xf32>
    %c0_6 = arith.constant 0 : index
    %c0_7 = arith.constant 0 : index
    %14 = vector.load %arg3[%c0_6, %c0_7] : memref<8x128xf32, #tpu.memory_space<vmem>>, vector<8x128xf32>
    tpu.vector_store %arg3[%c0_6, %c0_7], %13 {strides = array<i32>} : memref<8x128xf32, #tpu.memory_space<vmem>>, vector<8x128xf32>,
    return
  }
  func.func @transform_0(%arg0: i32, %arg1: memref<3xf32, #tpu.memory_space<smem>>) -> (i32, i32, i32) {
    %c0_i32 = arith.constant 0 : i32
    %c0_i32_0 = arith.constant 0 : i32
    %c0_i32_1 = arith.constant 0 : i32
    return %c0_i32, %arg0, %c0_i32_0 : i32, i32, i32
  }
  func.func @transform_1(%arg0: i32, %arg1: memref<3xf32, #tpu.memory_space<smem>>) -> (i32, i32) {
    %c0_i32 = arith.constant 0 : i32
    %c0_i32_0 = arith.constant 0 : i32
    return %arg0, %c0_i32 : i32, i32
  }
}

</mosaic_0001>

<bundles_post_ra>
// kernel: tpu_custom_call.1
= control target key start
LH: loop header
LB: loop body
LE: loop exit
PB: predicated region body
PF: predicated region fallthrough
CT: control target
= control target key end

     0   :  { %s118_s9 = smov [#allocation3]   ;;  %s147_s0 = inlined_call_operand.hbm [shape: f32[3], index: 0, kind: input, shape index: {}]   ;;  %s148_s1 = inlined_call_operand.hbm [shape: f32[2,8,128], index: 1, kind: input, shape index: {}]   ;;  %s149_s2 = inlined_call_operand.hbm [shape: f32[8,128], index: 2, kind: output, shape index: {}]  }
   0x1   :  { %8 = dma.hbm_to_smem %s147_s0, 16, %s118_s9, [#allocation2] }
   0x2   :  { %112 = dma.done.wait [#allocation2], 16 }
   0x3   :  { %113 = vsyncadd [#allocation2], 4294967280 }
   0x4   :  { %10 = sfence }
   0x5   :  { %11 = vsyncpa [#allocation5], 0 }
   0x6   :  { %12 = vsyncpa [#allocation6], 0  ;;  %s119_s12 = smov [#allocation4]  }
   0x7   :  { %s18_s13 = sshll.u32 %s119_s12, 4  ;;  %s19_s13 = int_to_ptr.vmem [resolvable:$true] %s18_s13 }
   0x8   :  { %s80_s14 = scalar_lea.vmem %s19_s13, 256  ;;  %p85_p1 = scmp.lt.s32.totalorder %s19_s13, %s19_s13 }
   0x9   :  { %p81_p0 = scmp.ne.s32.totalorder %s19_s13, %s80_s14  ;;  %p86_p2 = scmp.lt.s32.totalorder %s80_s14, %s80_s14 }
   0xb   :  { %p87_p3 = por %p86_p2, %p85_p1 }
   0xd   :  { %p88_p4 = pnand %p87_p3, %p81_p0 }
   0xf   :  { %91 = shalt.err (!%p88_p4)
}
  0x10   :  { %s120_s15 = smov 128   ;;  %s121_s16 = smov 8  }
  0x11   :  { %24 = dma.hbm_to_vmem [thread:$0]  %s148_s1, 256, %s19_s13, [#allocation5], %s120_s15, %s120_s15, %s121_s16  }
  0x12   :  { %114 = dma.done.wait [#allocation5], 256  }
  0x13   :  { %115 = vsyncadd [#allocation5], 4294967040  ;;  %s28_s0 = sld [smem:[#allocation3]]  ;;  %v31_v0 = vld [vmem:[#allocation4] sm:$0xff]  ;;  %v35_v2 = vld [vmem:[#allocation4 + $0x8] sm:$0xff]  ;;  %s122_s21 = smov [#allocation7]  }
  0x14   :  { %s57_s19 = sld [smem:[#allocation3 + $0x1]]  ;;  %s48_s22 = sshll.u32 %s122_s21, 4  ;;  %s49_s22 = int_to_ptr.vmem [resolvable:$true] %s48_s22 }
  0x15   :  { %s58_s20 = sld [smem:[#allocation3 + $0x2]]  ;;  %s92_s23 = scalar_lea.vmem %s49_s22, 128 }
  0x16   :  { %p93_p5 = scmp.ne.s32.totalorder %s49_s22, %s92_s23  ;;  %p97_p6 = scmp.lt.s32.totalorder %s49_s22, %s49_s22 }
  0x17   :  { %p98_p7 = scmp.lt.s32.totalorder %s92_s23, %s92_s23 }
  0x19   :  { %v32_v1 = vstv %s28_s0  ;;  %p99_p8 = por %p98_p7, %p97_p6 }
  0x1a   :  { %v33_v3 = vmul.f32 %v32_v1, %v31_v0  ;;  %v36_v4 = vstv %s57_s19 }
  0x1b   :  { %v37_v5 = vmul.f32 %v36_v4, %v35_v2  ;;  %v39_v6 = vstv %s58_s20  ;;  %p100_p9 = pnand %p99_p8, %p93_p5 }
  0x1d   :  { %v38_v7 = vadd.f32 %v37_v5, %v33_v3 }
  0x1f   :  { %v40_v8 = vadd.f32 %v39_v6, %v38_v7 }
  0x21   :  { %41 = vst [vmem:[#allocation7] sm:$0xff] %v40_v8 }
  0x22   :  { %103 = shalt.err (!%p100_p9)
}
  0x23   :  { %51 = dma.vmem_to_hbm [thread:$0]  %s49_s22, 128, %s149_s2, [#allocation6]  }
  0x24   :  { %116 = dma.done.wait [#allocation6], 128  }
  0x25   :  { %117 = vsyncadd [#allocation6], 4294967168 }
  0x26   :  { %55 = vsyncpa [#allocation5], 1 }
  0x27   :  { %56 = vsyncpa [#allocation6], 1 }

</bundles_post_ra>
